<compile_context>
chip_gen: v7x
topology: tpu7x:2x2x1
jax: 0.10.0
libtpu: 0.0.40
codegen_flags: <defaults>
</compile_context>

<pallas_src>
import functools

import numpy as np
import jax
import jax.numpy as jnp
from jax.experimental import pallas as pl
from jax.experimental.pallas import tpu as pltpu


def _soft_threshold_kernel(x_ref, fcw_ref, fcb_ref, o_ref, *, W, n_per_block):
    """One batch-chunk: x_ref is a lane-dense (C, n_per_block*W) slab."""
    C = x_ref.shape[0]
    xs = x_ref[...]                                   # (C, nb*W) f32
    x_abs = jnp.abs(xs)

    # AdaptiveAvgPool1d(1) on |x|: segmented mean — each sample owns exactly
    # one aligned W-lane window, so this is a cheap per-sample XLU reduction.
    cols = [jnp.mean(x_abs[:, n * W:(n + 1) * W], axis=1, keepdims=True)
            for n in range(n_per_block)]
    avg = jnp.concatenate(cols, axis=1) if n_per_block > 1 else cols[0]  # (C, nb)

    # fc: Linear (BN1d scale/bias folded host-side) -> ReLU -> Linear -> Sigmoid,
    # batched over all samples in the chunk as (C,C)@(C,nb) MXU dots.
    w1 = fcw_ref[:, :C]
    w2 = fcw_ref[:, C:]
    b1 = fcb_ref[:, 0:1]
    b2 = fcb_ref[:, 1:2]
    t = jnp.dot(w1, avg, preferred_element_type=jnp.float32,
                precision=jax.lax.Precision.HIGHEST) + b1
    t = jnp.maximum(t, 0.0)
    z = jnp.dot(w2, t, preferred_element_type=jnp.float32,
                precision=jax.lax.Precision.HIGHEST) + b2
    s = 1.0 / (1.0 + jnp.exp(-z))                     # exact sigmoid (review fix)
    thr = avg * s                                     # (C, nb), thr >= 0

    # soft threshold: sign(h)*max(|h|-thr, 0) == h - clip(h, -thr, thr) (thr>=0).
    # Per-sample broadcast of the (C,1) threshold column over its 128-lane
    # window; stores are unmasked, lane-dense (offsets are multiples of 128).
    for n in range(n_per_block):
        h = xs[:, n * W:(n + 1) * W]
        t_n = thr[:, n:n + 1]
        o_ref[:, n * W:(n + 1) * W] = h - jnp.clip(h, -t_n, t_n)


def fold_params(params, eps=1e-5):
    """Fold BN1d (eval mode) into fc1 and pack weights/biases. Call ONCE."""
    scale = params["bn_gamma"] / jnp.sqrt(params["bn_rvar"] + eps)
    bias = params["bn_beta"] - params["bn_rmean"] * scale
    fc1w = scale[:, None] * params["fc1_w"]
    fc1b = scale * params["fc1_b"] + bias
    fcw = jnp.concatenate([fc1w, params["fc2_w"]], axis=1)    # (C, 2C)
    fcb = jnp.stack([fc1b, params["fc2_b"]], axis=1)          # (C, 2)
    return fcw, fcb


def soft_threshold_forward(x_nc1w, fcw, fcb, *, batch_chunk=None):
    """soft_thresshold.forward: (N, C, 1, W) -> (N, C, 1, W)."""
    N, C, H, W = x_nc1w.shape
    assert H == 1, "expects (N, C, 1, W) 1-D signals"
    bc = N if batch_chunk is None else batch_chunk    # samples per grid step
    assert N % bc == 0
    NW = N * W

    # layout plumbing (fused under jit): (N, C, 1, W) -> lane-dense (C, N*W)
    x_slab = jnp.transpose(x_nc1w[:, :, 0, :].astype(jnp.float32),
                           (1, 0, 2)).reshape(C, NW)

    kernel = functools.partial(_soft_threshold_kernel, W=W, n_per_block=bc)
    out_slab = pl.pallas_call(
        kernel,
        out_shape=jax.ShapeDtypeStruct((C, NW), jnp.float32),
        grid=(N // bc,),
        in_specs=[pl.BlockSpec((C, bc * W), lambda i: (0, i)),   # slab chunk
                  pl.BlockSpec((C, 2 * C), lambda i: (0, 0)),    # packed fc weights
                  pl.BlockSpec((C, 2), lambda i: (0, 0))],       # packed fc biases
        out_specs=pl.BlockSpec((C, bc * W), lambda i: (0, i)),
        compiler_params=pltpu.CompilerParams(
            dimension_semantics=("parallel",)),   # shards batch chunks on v7x
    )(x_slab, fcw, fcb)

    return jnp.transpose(out_slab.reshape(C, N, W), (1, 0, 2))[:, :, None, :]


def make_params(key, C):
    ks = jax.random.split(key, 8)

    def normal(k, shape, scale=0.3):
        return scale * jax.random.normal(k, shape, jnp.float32)

    return {
        "fc1_w": normal(ks[0], (C, C)),
        "fc1_b": 0.1 * jax.random.normal(ks[1], (C,), jnp.float32),
        "fc2_w": normal(ks[2], (C, C)),
        "fc2_b": 0.1 * jax.random.normal(ks[3], (C,), jnp.float32),
        "bn_gamma": 1.0 + 0.1 * jax.random.normal(ks[4], (C,), jnp.float32),
        "bn_beta": 0.1 * jax.random.normal(ks[5], (C,), jnp.float32),
        "bn_rmean": 0.1 * jax.random.normal(ks[6], (C,), jnp.float32),
        "bn_rvar": jax.random.uniform(ks[7], (C,), jnp.float32,
                                      minval=0.5, maxval=1.5),
    }


def reference_forward(x_nc1w, params, eps=1e-5):
    """Plain-JAX reference of soft_thresshold.forward (eval-mode BN1d)."""
    x = x_nc1w[:, :, 0, :].astype(jnp.float32)        # torch .squeeze()
    x_raw = x
    x_abs = jnp.abs(x)
    avg = jnp.mean(x_abs, axis=2)                     # (N, C)
    scale = params["bn_gamma"] / jnp.sqrt(params["bn_rvar"] + eps)
    bias = params["bn_beta"] - params["bn_rmean"] * scale
    t = avg @ params["fc1_w"].T + params["fc1_b"]
    t = jnp.maximum(t * scale + bias, 0.0)
    z = t @ params["fc2_w"].T + params["fc2_b"]
    s = 1.0 / (1.0 + jnp.exp(-z))
    thr = (avg * s)[:, :, None]                       # (N, C, 1)
    st = jnp.sign(x_raw) * jnp.maximum(x_abs - thr, 0.0)
    return st[:, :, None, :]


if __name__ == "__main__":
    jax.config.update("jax_default_matmul_precision", "highest")

    N, C, W = 4, 8, 128
    key = jax.random.PRNGKey(0)
    kx, kp = jax.random.split(key)
    x = jax.random.normal(kx, (N, C, 1, W), jnp.float32)
    params = make_params(kp, C)

    # Fold/pack once, outside the per-call path; jit the forward wrapper.
    fcw, fcb = fold_params(params)
    fwd = jax.jit(soft_threshold_forward)

    out = jax.block_until_ready(fwd(x, fcw, fcb))

    ref = reference_forward(x, params)
    assert out.shape == (N, C, 1, W)
    np.testing.assert_allclose(np.asarray(out), np.asarray(ref),
                               atol=2e-3, rtol=2e-3)
    print("KERNEL_OK")
</pallas_src>

<mosaic_0001>
module attributes {stable_mosaic.version = 11 : i64} {
  func.func @_soft_threshold_kernel(%arg0: i32, %arg1: memref<8x512xf32, #tpu.memory_space<vmem>>, %arg2: memref<8x16xf32, #tpu.memory_space<vmem>>, %arg3: memref<8x2xf32, #tpu.memory_space<vmem>>, %arg4: memref<8x512xf32, #tpu.memory_space<vmem>>) attributes {dimension_semantics = [#tpu.dimension_semantics<parallel>], iteration_bounds = array<i64: 1>, scalar_prefetch = 0 : i64, scratch_operands = 0 : i64, tpu.core_type = #tpu.core_type<tc>, window_params = [{transform_indices = @transform_0, window_bounds = array<i64: 8, 512>}, {pipeline_mode = #tpu.pipeline_mode<synchronous>, transform_indices = @transform_1, window_bounds = array<i64: 8, 16>}, {pipeline_mode = #tpu.pipeline_mode<synchronous>, transform_indices = @transform_2, window_bounds = array<i64: 8, 2>}, {transform_indices = @transform_3, window_bounds = array<i64: 8, 512>}]} {
    %c0 = arith.constant 0 : index
    %c0_0 = arith.constant 0 : index
    %0 = vector.load %arg1[%c0, %c0_0] : memref<8x512xf32, #tpu.memory_space<vmem>>, vector<8x512xf32>
    %1 = math.absf %0 : vector<8x512xf32>
    %2 = vector.extract_strided_slice %1 {offsets = [0, 0], sizes = [8, 128], strides = [1, 1]} : vector<8x512xf32> to vector<8x128xf32>
    %cst = arith.constant dense<0.000000e+00> : vector<8xf32>
    %3 = vector.multi_reduction <add>, %2, %cst [1] : vector<8x128xf32> to vector<8xf32>
    %4 = vector.shape_cast %3 : vector<8xf32> to vector<8x1xf32>
    %cst_1 = arith.constant 1.280000e+02 : f32
    %5 = vector.broadcast %cst_1 : f32 to vector<8x1xf32>
    %6 = arith.divf %4, %5 : vector<8x1xf32>
    %7 = vector.extract_strided_slice %1 {offsets = [0, 128], sizes = [8, 128], strides = [1, 1]} : vector<8x512xf32> to vector<8x128xf32>
    %cst_2 = arith.constant dense<0.000000e+00> : vector<8xf32>
    %8 = vector.multi_reduction <add>, %7, %cst_2 [1] : vector<8x128xf32> to vector<8xf32>
    %9 = vector.shape_cast %8 : vector<8xf32> to vector<8x1xf32>
    %cst_3 = arith.constant 1.280000e+02 : f32
    %10 = vector.broadcast %cst_3 : f32 to vector<8x1xf32>
    %11 = arith.divf %9, %10 : vector<8x1xf32>
    %12 = vector.extract_strided_slice %1 {offsets = [0, 256], sizes = [8, 128], strides = [1, 1]} : vector<8x512xf32> to vector<8x128xf32>
    %cst_4 = arith.constant dense<0.000000e+00> : vector<8xf32>
    %13 = vector.multi_reduction <add>, %12, %cst_4 [1] : vector<8x128xf32> to vector<8xf32>
    %14 = vector.shape_cast %13 : vector<8xf32> to vector<8x1xf32>
    %cst_5 = arith.constant 1.280000e+02 : f32
    %15 = vector.broadcast %cst_5 : f32 to vector<8x1xf32>
    %16 = arith.divf %14, %15 : vector<8x1xf32>
    %17 = vector.extract_strided_slice %1 {offsets = [0, 384], sizes = [8, 128], strides = [1, 1]} : vector<8x512xf32> to vector<8x128xf32>
    %cst_6 = arith.constant dense<0.000000e+00> : vector<8xf32>
    %18 = vector.multi_reduction <add>, %17, %cst_6 [1] : vector<8x128xf32> to vector<8xf32>
    %19 = vector.shape_cast %18 : vector<8xf32> to vector<8x1xf32>
    %cst_7 = arith.constant 1.280000e+02 : f32
    %20 = vector.broadcast %cst_7 : f32 to vector<8x1xf32>
    %21 = arith.divf %19, %20 : vector<8x1xf32>
    %22 = tpu.concatenate %6, %11, %16, %21 in 1 : vector<8x1xf32>, vector<8x1xf32>, vector<8x1xf32>, vector<8x1xf32> -> vector<8x4xf32>
    %c0_8 = arith.constant 0 : index
    %c0_9 = arith.constant 0 : index
    %23 = vector.load %arg2[%c0_8, %c0_9] : memref<8x16xf32, #tpu.memory_space<vmem>>, vector<8x8xf32>
    %c0_10 = arith.constant 0 : index
    %c8 = arith.constant 8 : index
    %24 = vector.load %arg2[%c0_10, %c8] : memref<8x16xf32, #tpu.memory_space<vmem>>, vector<8x8xf32>
    %c0_11 = arith.constant 0 : index
    %c0_12 = arith.constant 0 : index
    %25 = vector.load %arg3[%c0_11, %c0_12] : memref<8x2xf32, #tpu.memory_space<vmem>>, vector<8x1xf32>
    %c0_13 = arith.constant 0 : index
    %c1 = arith.constant 1 : index
    %26 = vector.load %arg3[%c0_13, %c1] : memref<8x2xf32, #tpu.memory_space<vmem>>, vector<8x1xf32>
    %cst_14 = arith.constant dense<0.000000e+00> : vector<8x4xf32>
    %27 = tpu.matmul %23, %22, %cst_14 {dimension_numbers = #tpu.dot_dimension_numbers<[1], [0], [0], [1], [0, 0, 1, 1], [], []>, precision = #tpu.contract_precision<fp32>} : vector<8x8xf32>, vector<8x4xf32>, vector<8x4xf32> -> vector<8x4xf32>
    %28 = vector.broadcast %25 : vector<8x1xf32> to vector<8x4xf32>
    %29 = arith.addf %27, %28 : vector<8x4xf32>
    %cst_15 = arith.constant 0.000000e+00 : f32
    %30 = vector.broadcast %cst_15 : f32 to vector<8x4xf32>
    %31 = arith.maximumf %29, %30 : vector<8x4xf32>
    %cst_16 = arith.constant dense<0.000000e+00> : vector<8x4xf32>
    %32 = tpu.matmul %24, %31, %cst_16 {dimension_numbers = #tpu.dot_dimension_numbers<[1], [0], [0], [1], [0, 0, 1, 1], [], []>, precision = #tpu.contract_precision<fp32>} : vector<8x8xf32>, vector<8x4xf32>, vector<8x4xf32> -> vector<8x4xf32>
    %33 = vector.broadcast %26 : vector<8x1xf32> to vector<8x4xf32>
    %34 = arith.addf %32, %33 : vector<8x4xf32>
    %cst_17 = arith.constant 0.000000e+00 : f32
    %35 = vector.broadcast %cst_17 : f32 to vector<8x4xf32>
    %36 = arith.subf %35, %34 : vector<8x4xf32>
    %37 = math.exp %36 : vector<8x4xf32>
    %cst_18 = arith.constant 1.000000e+00 : f32
    %38 = vector.broadcast %cst_18 : f32 to vector<8x4xf32>
    %39 = arith.addf %38, %37 : vector<8x4xf32>
    %cst_19 = arith.constant 1.000000e+00 : f32
    %40 = vector.broadcast %cst_19 : f32 to vector<8x4xf32>
    %41 = arith.divf %40, %39 : vector<8x4xf32>
    %42 = arith.mulf %22, %41 : vector<8x4xf32>
    %43 = vector.extract_strided_slice %0 {offsets = [0, 0], sizes = [8, 128], strides = [1, 1]} : vector<8x512xf32> to vector<8x128xf32>
    %44 = vector.extract_strided_slice %42 {offsets = [0, 0], sizes = [8, 1], strides = [1, 1]} : vector<8x4xf32> to vector<8x1xf32>
    %cst_20 = arith.constant 0.000000e+00 : f32
    %45 = vector.broadcast %cst_20 : f32 to vector<8x1xf32>
    %46 = arith.subf %45, %44 : vector<8x1xf32>
    %47 = vector.broadcast %46 : vector<8x1xf32> to vector<8x128xf32>
    %48 = arith.maximumf %47, %43 : vector<8x128xf32>
    %49 = vector.broadcast %44 : vector<8x1xf32> to vector<8x128xf32>
    %50 = arith.minimumf %49, %48 : vector<8x128xf32>
    %51 = arith.subf %43, %50 : vector<8x128xf32>
    %c0_21 = arith.constant 0 : index
    %c0_22 = arith.constant 0 : index
    %52 = vector.load %arg4[%c0_21, %c0_22] : memref<8x512xf32, #tpu.memory_space<vmem>>, vector<8x128xf32>
    tpu.vector_store %arg4[%c0_21, %c0_22], %51 {strides = array<i32>} : memref<8x512xf32, #tpu.memory_space<vmem>>, vector<8x128xf32>,
    %53 = vector.extract_strided_slice %0 {offsets = [0, 128], sizes = [8, 128], strides = [1, 1]} : vector<8x512xf32> to vector<8x128xf32>
    %54 = vector.extract_strided_slice %42 {offsets = [0, 1], sizes = [8, 1], strides = [1, 1]} : vector<8x4xf32> to vector<8x1xf32>
    %cst_23 = arith.constant 0.000000e+00 : f32
    %55 = vector.broadcast %cst_23 : f32 to vector<8x1xf32>
    %56 = arith.subf %55, %54 : vector<8x1xf32>
    %57 = vector.broadcast %56 : vector<8x1xf32> to vector<8x128xf32>
    %58 = arith.maximumf %57, %53 : vector<8x128xf32>
    %59 = vector.broadcast %54 : vector<8x1xf32> to vector<8x128xf32>
    %60 = arith.minimumf %59, %58 : vector<8x128xf32>
    %61 = arith.subf %53, %60 : vector<8x128xf32>
    %c0_24 = arith.constant 0 : index
    %c128 = arith.constant 128 : index
    %62 = vector.load %arg4[%c0_24, %c128] : memref<8x512xf32, #tpu.memory_space<vmem>>, vector<8x128xf32>
    tpu.vector_store %arg4[%c0_24, %c128], %61 {strides = array<i32>} : memref<8x512xf32, #tpu.memory_space<vmem>>, vector<8x128xf32>,
    %63 = vector.extract_strided_slice %0 {offsets = [0, 256], sizes = [8, 128], strides = [1, 1]} : vector<8x512xf32> to vector<8x128xf32>
    %64 = vector.extract_strided_slice %42 {offsets = [0, 2], sizes = [8, 1], strides = [1, 1]} : vector<8x4xf32> to vector<8x1xf32>
    %cst_25 = arith.constant 0.000000e+00 : f32
    %65 = vector.broadcast %cst_25 : f32 to vector<8x1xf32>
    %66 = arith.subf %65, %64 : vector<8x1xf32>
    %67 = vector.broadcast %66 : vector<8x1xf32> to vector<8x128xf32>
    %68 = arith.maximumf %67, %63 : vector<8x128xf32>
    %69 = vector.broadcast %64 : vector<8x1xf32> to vector<8x128xf32>
    %70 = arith.minimumf %69, %68 : vector<8x128xf32>
    %71 = arith.subf %63, %70 : vector<8x128xf32>
    %c0_26 = arith.constant 0 : index
    %c256 = arith.constant 256 : index
    %72 = vector.load %arg4[%c0_26, %c256] : memref<8x512xf32, #tpu.memory_space<vmem>>, vector<8x128xf32>
    tpu.vector_store %arg4[%c0_26, %c256], %71 {strides = array<i32>} : memref<8x512xf32, #tpu.memory_space<vmem>>, vector<8x128xf32>,
    %73 = vector.extract_strided_slice %0 {offsets = [0, 384], sizes = [8, 128], strides = [1, 1]} : vector<8x512xf32> to vector<8x128xf32>
    %74 = vector.extract_strided_slice %42 {offsets = [0, 3], sizes = [8, 1], strides = [1, 1]} : vector<8x4xf32> to vector<8x1xf32>
    %cst_27 = arith.constant 0.000000e+00 : f32
    %75 = vector.broadcast %cst_27 : f32 to vector<8x1xf32>
    %76 = arith.subf %75, %74 : vector<8x1xf32>
    %77 = vector.broadcast %76 : vector<8x1xf32> to vector<8x128xf32>
    %78 = arith.maximumf %77, %73 : vector<8x128xf32>
    %79 = vector.broadcast %74 : vector<8x1xf32> to vector<8x128xf32>
    %80 = arith.minimumf %79, %78 : vector<8x128xf32>
    %81 = arith.subf %73, %80 : vector<8x128xf32>
    %c0_28 = arith.constant 0 : index
    %c384 = arith.constant 384 : index
    %82 = vector.load %arg4[%c0_28, %c384] : memref<8x512xf32, #tpu.memory_space<vmem>>, vector<8x128xf32>
    tpu.vector_store %arg4[%c0_28, %c384], %81 {strides = array<i32>} : memref<8x512xf32, #tpu.memory_space<vmem>>, vector<8x128xf32>,
    return
  }
  func.func @transform_0(%arg0: i32) -> (i32, i32) {
    %c0_i32 = arith.constant 0 : i32
    %c0_i32_0 = arith.constant 0 : i32
    return %c0_i32, %arg0 : i32, i32
  }
  func.func @transform_1(%arg0: i32) -> (i32, i32) {
    %c0_i32 = arith.constant 0 : i32
    %c0_i32_0 = arith.constant 0 : i32
    %c0_i32_1 = arith.constant 0 : i32
    return %c0_i32, %c0_i32_0 : i32, i32
  }
  func.func @transform_2(%arg0: i32) -> (i32, i32) {
    %c0_i32 = arith.constant 0 : i32
    %c0_i32_0 = arith.constant 0 : i32
    %c0_i32_1 = arith.constant 0 : i32
    return %c0_i32, %c0_i32_0 : i32, i32
  }
  func.func @transform_3(%arg0: i32) -> (i32, i32) {
    %c0_i32 = arith.constant 0 : i32
    %c0_i32_0 = arith.constant 0 : i32
    return %c0_i32, %arg0 : i32, i32
  }
}

</mosaic_0001>

<bundles_post_ra>
// kernel: soft_threshold_forward.1
= control target key start
LH: loop header
LB: loop body
LE: loop exit
PB: predicated region body
PF: predicated region fallthrough
CT: control target
= control target key end

     0   :  { %8 = vsyncpa [#allocation3], 0  ;;  %s1344_s0 = inlined_call_operand.hbm [shape: f32[8,512], index: 0, kind: input, shape index: {}]   ;;  %s1345_s1 = inlined_call_operand.vmem [shape: f32[8,16], index: 1, kind: input, shape index: {}]   ;;  %s1346_s2 = inlined_call_operand.vmem [shape: f32[8,2], index: 2, kind: input, shape index: {}]   ;;  %s1347_s3 = inlined_call_operand.hbm [shape: f32[8,512], index: 3, kind: output, shape index: {}]  }
   0x1   :  { %9 = vsyncpa [#allocation4], 0  ;;  %s1216_s12 = smov [#allocation2]   ;;  %s1168_s16 = scalar_lea.hbm %s1344_s0, 512 }
   0x2   :  { %s16_s13 = sshll.u32 %s1216_s12, 4  ;;  %p1169_p0 = scmp.ne.s32.totalorder %s1344_s0, %s1168_s16  ;;  %s17_s13 = int_to_ptr.vmem [resolvable:$true] %s16_s13 }
   0x3   :  { %p1172_p1 = scmp.lt.u32.totalorder %s1168_s16, %s1344_s0 }
   0x5   :  { %p1174_p2 = pnand %p1172_p1, %p1169_p0 }
   0x7   :  { %1177 = shalt.err (!%p1174_p2)
}
   0x8   :  { %s1178_s21 = scalar_lea.vmem %s17_s13, 512  ;;  %p1183_p4 = scmp.lt.s32.totalorder %s17_s13, %s17_s13 }
   0x9   :  { %p1179_p3 = scmp.ne.s32.totalorder %s17_s13, %s1178_s21  ;;  %p1184_p5 = scmp.lt.s32.totalorder %s1178_s21, %s1178_s21 }
   0xb   :  { %p1185_p6 = por %p1184_p5, %p1183_p4 }
   0xd   :  { %p1186_p7 = pnand %p1185_p6, %p1179_p3 }
   0xf   :  { %1189 = shalt.err (!%p1186_p7)
}
  0x10   :  { %19 = dma.hbm_to_vmem [thread:$0]  %s1344_s0, 512, %s17_s13, [#allocation3]  }
  0x11   :  { %1212 = dma.done.wait [#allocation3], 512  }
  0x12   :  { %1213 = vsyncadd [#allocation3], 4294966784  ;;  %v1257_v0 = vld [vmem:[#allocation2] sm:$0xff]  ;;  %v1259_v1 = vld [vmem:[#allocation2 + $0x10] sm:$0xff]  ;;  %v1217_v8 = vmov 0.0   ;;  %vm1218_vm0 = vmmov 0  }
  0x13   :  { %v1261_v2 = vld [vmem:[#allocation2 + $0x8] sm:$0xff]  ;;  %v31_v3 = vand.u32 2147483647, %v1257_v0  ;;  %v33_v4 = vand.u32 2147483647, %v1259_v1  ;;  %v1265_v5 = vld [vmem:[#allocation2 + $0x18] sm:$0xff]  ;;  %1063 = vmatprep.subr.mxu0 %v1217_v8  ;;  %1093 = vmatprep.subr.mxu1 %v1217_v8 }
  0x14   :  { %v32_v6 = vand.u32 2147483647, %v1261_v2  ;;  %v34_v7 = vand.u32 2147483647, %v1265_v5  ;;  %1065 = vmatprep.mubr.msk.f32.mxu0 %vm1218_vm0, %v1217_v8  ;;  %1095 = vmatprep.mubr.msk.f32.mxu1 %vm1218_vm0, %v1217_v8  ;;  %v54_v9 = vld [vmem:[%s1345_s1] sm:$0xff]  ;;  %v1219_v11 = vmov 0  }
  0x15   :  { %35 = vadd.xlane.f32.xlu0 %v31_v3  ;;  %42 = vadd.xlane.f32.xlu1 %v33_v4  ;;  %v55_v10 = vld [vmem:[%s1346_s2] sm:$0xff]  ;;  %s1220_s27 = smov 120   ;;  %vm61_vm1 = vcmask 64512   ;;  %vm48_vm2 = vcmask 7168   ;;  %vm50_vm3 = vcmask 15360   ;;  %vm52_vm4 = vcmask 23552  }
  0x16   :  { %1154 = vset.pattern.permute.xlu0 %v1219_v11  ;;  %v63_v12 = vsel %vm61_vm1, %v54_v9, 0  ;;  %v1221_v34 = vmov 1   ;;  %v1222_v52 = vmov 2   ;;  %v1223_v63 = vmov 3   ;;  %s1224_s1 = smov [#allocation5]  }
  0x17   :  { %v131_v13 = vand.u32 4294901760, %v63_v12  ;;  %1155 = vset.pattern.permute.xlu1 %v1221_v34  ;;  %s1030_s2 = sshll.u32 %s1224_s1, 4  ;;  %s1031_s2 = int_to_ptr.vmem [resolvable:$true] %s1030_s2 }
  0x18   :  { %s1190_s28 = scalar_lea.vmem %s1031_s2, 512  ;;  %p1195_p9 = scmp.lt.s32.totalorder %s1031_s2, %s1031_s2 }
  0x19   :  { %39 = vadd.xlane.f32.xlu0 %v32_v6  ;;  %45 = vadd.xlane.f32.xlu1 %v34_v7  ;;  %v132_v14 = vsub.f32 %v63_v12, %v131_v13  ;;  %p1191_p8 = scmp.ne.s32.totalorder %s1031_s2, %s1190_s28  ;;  %p1196_p10 = scmp.lt.s32.totalorder %s1190_s28, %s1190_s28 }
  0x1b   :  { %v133_v17 = vand.u32 4294901760, %v132_v14  ;;  %p1197_p11 = por %p1196_p10, %p1195_p9 }
  0x1d   :  { %v134_v23 = vsub.f32 %v132_v14, %v133_v17  ;;  %p1198_p12 = pnand %p1197_p11, %p1191_p8 }
  0x1f   :  { %v135_v28 = vand.u32 4294901760, %v134_v23 }
  0x2a   :  { %516 = vrot.lane.b32.xlu1 %v54_v9, %s1220_s27 }
  0x2e   :  { %513 = vperm.xlu1 %1155, %v55_v10  }
  0x2f   :  { %58 = vperm.xlu0 %1154, %v55_v10  }
  0x32   :  { %1156 = vset.pattern.permute.xlu1 %v1219_v11 }
  0x33   :  { %1162 = vset.pattern.permute.xlu0 %v1222_v52 }
  0xa2   :  { %v36_v15 = vpop.xlane.xlu0 %35  ;;  %v43_v16 = vpop.xlane.xlu1 %42 }
  0xa3   :  { %v38_v20 = vmul.f32 0.0078125, %v36_v15  ;;  %v44_v24 = vmul.f32 0.0078125, %v43_v16 }
  0xa6   :  { %v40_v18 = vpop.xlane.xlu0 %39  ;;  %v46_v19 = vpop.xlane.xlu1 %45 }
  0xa7   :  { %v41_v21 = vmul.f32 0.0078125, %v40_v18  ;;  %v47_v22 = vmul.f32 0.0078125, %v46_v19 }
  0xa9   :  { %v49_v25 = vsel %vm48_vm2, %v38_v20, %v41_v21 }
  0xaa   :  { %v51_v26 = vsel %vm50_vm3, %v49_v25, %v44_v24  ;;  %v517_v35 = vpop.permute.xlu1 %516 }
  0xab   :  { %v1283_v27 = vsel %vm52_vm4, %v51_v26, %v47_v22  ;;  %v518_v36 = vsel %vm61_vm1, %v517_v35, 0 }
  0xac   :  { %v66_v29 = vand.u32 4294901760, %v1283_v27  ;;  %v586_v37 = vand.u32 4294901760, %v518_v36 }
  0xae   :  { %v143_v30 = vsub.f32 %v1283_v27, %v66_v29  ;;  %1064 = vmatpush3.msra.mxu0 %v66_v29  ;;  %v587_v38 = vsub.f32 %v518_v36, %v586_v37  ;;  %v59_v40 = vpop.permute.xlu0 %58  ;;  %v514_v53 = vpop.permute.xlu1 %513 }
  0xaf   :  { %1066 = vmatmul.mubr.f32.vlgmr.msra.gmra.mrb[0].mxu0 %v135_v28  ;;  %1068 = vmatprep.subr.mxu0 %v1217_v8 }
  0xb0   :  { %v144_v31 = vand.u32 4294901760, %v143_v30  ;;  %1070 = vmatprep.mubr.msk.f32.mxu0 %vm1218_vm0, %v1217_v8  ;;  %v588_v39 = vand.u32 4294901760, %v587_v38 }
  0xb2   :  { %v145_v32 = vsub.f32 %v143_v30, %v144_v31  ;;  %v589_v44 = vsub.f32 %v587_v38, %v588_v39 }
  0xb4   :  { %v146_v33 = vand.u32 4294901760, %v145_v32  ;;  %v590_v47 = vand.u32 4294901760, %v589_v44 }
  0xb6   :  { %1069 = vmatpush3.msra.mxu0 %v146_v33 }
  0xb7   :  { %1071 = vmatmul.mubr.f32.vlgmr.msra.gmra.mrb[0].mxu0 %v131_v13  ;;  %1073 = vmatprep.subr.mxu0 %v1217_v8 }
  0xb8   :  { %1074 = vmatpush3.msra.mxu0 %v143_v30  ;;  %1075 = vmatprep.mubr.msk.f32.mxu0 %vm1218_vm0, %v1217_v8 }
  0xb9   :  { %1078 = vmatprep.subr.mxu0 %v1217_v8 }
  0xbf   :  { %1076 = vmatmul.mubr.f32.vlgmr.msra.gmra.mrb[0].mxu0 %v132_v14 }
  0xc0   :  { %1079 = vmatpush3.msra.mxu0 %v66_v29  ;;  %1080 = vmatprep.mubr.msk.f32.mxu0 %vm1218_vm0, %v1217_v8 }
  0xc1   :  { %1083 = vmatprep.subr.mxu0 %v1217_v8 }
  0xc7   :  { %1081 = vmatmul.mubr.f32.vlgmr.msra.gmra.mrb[0].mxu0 %v133_v17 }
  0xc8   :  { %1084 = vmatpush3.msra.mxu0 %v144_v31  ;;  %1085 = vmatprep.mubr.msk.f32.mxu0 %vm1218_vm0, %v1217_v8 }
  0xc9   :  { %1088 = vmatprep.subr.mxu0 %v1217_v8 }
  0xcf   :  { %1086 = vmatmul.mubr.f32.vlgmr.msra.gmra.mrb[0].mxu0 %v131_v13 }
  0xd0   :  { %1089 = vmatpush3.msra.mxu0 %v66_v29  ;;  %1090 = vmatprep.mubr.msk.f32.mxu0 %vm1218_vm0, %v1217_v8 }
  0xd7   :  { %1091 = vmatmul.mubr.f32.vlgmr.msra.gmra.mrb[0].mxu0 %v131_v13 }
 0x1aa   :  { %v507_v41 = vpop.f32.mrb[0].mxu0 }
 0x1ab   :  { %v1123_v42 = vadd.f32 %v507_v41, %v59_v40  ;;  %v1092_v43 = vpop.f32.mrb[1].mxu0 }
 0x1ad   :  { %v511_v45 = vmax.f32 %v1123_v42, 0.0 }
 0x1af   :  { %v521_v46 = vand.u32 4294901760, %v511_v45 }
 0x1b1   :  { %v598_v48 = vsub.f32 %v511_v45, %v521_v46  ;;  %1094 = vmatpush3.msra.mxu1 %v521_v46 }
 0x1b2   :  { %1096 = vmatmul.mubr.f32.vlgmr.msra.gmra.mrb[0].mxu1 %v590_v47  ;;  %1098 = vmatprep.subr.mxu1 %v1217_v8 }
 0x1b3   :  { %v599_v49 = vand.u32 4294901760, %v598_v48  ;;  %1100 = vmatprep.mubr.msk.f32.mxu1 %vm1218_vm0, %v1217_v8 }
 0x1b5   :  { %v600_v50 = vsub.f32 %v598_v48, %v599_v49 }
 0x1b7   :  { %v601_v51 = vand.u32 4294901760, %v600_v50 }
 0x1b9   :  { %1099 = vmatpush3.msra.mxu1 %v601_v51 }
 0x1ba   :  { %1101 = vmatmul.mubr.f32.vlgmr.msra.gmra.mrb[0].mxu1 %v586_v37  ;;  %1103 = vmatprep.subr.mxu1 %v1217_v8 }
 0x1bb   :  { %1104 = vmatpush3.msra.mxu1 %v598_v48  ;;  %1105 = vmatprep.mubr.msk.f32.mxu1 %vm1218_vm0, %v1217_v8 }
 0x1bc   :  { %1108 = vmatprep.subr.mxu1 %v1217_v8 }
 0x1c2   :  { %1106 = vmatmul.mubr.f32.vlgmr.msra.gmra.mrb[0].mxu1 %v587_v38 }
 0x1c3   :  { %1109 = vmatpush3.msra.mxu1 %v521_v46  ;;  %1110 = vmatprep.mubr.msk.f32.mxu1 %vm1218_vm0, %v1217_v8 }
 0x1c4   :  { %1113 = vmatprep.subr.mxu1 %v1217_v8 }
 0x1ca   :  { %1111 = vmatmul.mubr.f32.vlgmr.msra.gmra.mrb[0].mxu1 %v588_v39 }
 0x1cb   :  { %1114 = vmatpush3.msra.mxu1 %v599_v49  ;;  %1115 = vmatprep.mubr.msk.f32.mxu1 %vm1218_vm0, %v1217_v8 }
 0x1cc   :  { %1118 = vmatprep.subr.mxu1 %v1217_v8 }
 0x1d2   :  { %1116 = vmatmul.mubr.f32.vlgmr.msra.gmra.mrb[0].mxu1 %v586_v37 }
 0x1d3   :  { %1119 = vmatpush3.msra.mxu1 %v521_v46  ;;  %1120 = vmatprep.mubr.msk.f32.mxu1 %vm1218_vm0, %v1217_v8 }
 0x1da   :  { %1121 = vmatmul.mubr.f32.vlgmr.msra.gmra.mrb[0].mxu1 %v586_v37 }
 0x2ad   :  { %v962_v54 = vpop.f32.mrb[0].mxu1 }
 0x2ae   :  { %v1124_v55 = vadd.f32 %v962_v54, %v514_v53  ;;  %v1122_v56 = vpop.f32.mrb[1].mxu1 }
 0x2b0   :  { %v966_v57 = vsub.f32 0.0, %v1124_v55 }
 0x2b2   :  { %v967_v58 = vmul.f32 1.442695, %v966_v57 }
 0x2b4   :  { %1164 = vpow2.f32 %v967_v58 }
 0x2be   :  { %v1165_v59 = vpop.eup %1164 }
 0x2bf   :  { %v969_v60 = vadd.f32 1.0, %v1165_v59 }
 0x2c1   :  { %1166 = vrcp.f32 %v969_v60 }
 0x2cb   :  { %v1167_v61 = vpop.eup %1166 }
 0x2cc   :  { %v972_v62 = vmul.f32 %v1167_v61, %v1283_v27 }
 0x2ce   :  { %1006 = vperm.xlu0 %1162, %v972_v62   ;;  %982 = vperm.xlu1 %1156, %v972_v62   ;;  %v973_v3 = vsub.f32 0.0, %v972_v62 }
 0x2d2   :  { %1157 = vset.pattern.permute.xlu1 %v1221_v34  ;;  %1163 = vset.pattern.permute.xlu0 %v1223_v63 }
 0x2d3   :  { %994 = vperm.xlu1 %1157, %v972_v62  }
 0x2d7   :  { %1158 = vset.pattern.permute.xlu1 %v1219_v11 }
 0x2d8   :  { %976 = vperm.xlu1 %1158, %v973_v3  }
 0x2dc   :  { %1159 = vset.pattern.permute.xlu1 %v1221_v34 }
 0x2dd   :  { %989 = vperm.xlu1 %1159, %v973_v3  }
 0x2e1   :  { %1160 = vset.pattern.permute.xlu1 %v1222_v52 }
 0x2e2   :  { %1001 = vperm.xlu1 %1160, %v973_v3  }
 0x2e6   :  { %1161 = vset.pattern.permute.xlu1 %v1223_v63 }
 0x2e7   :  { %1013 = vperm.xlu1 %1161, %v973_v3  }
 0x2eb   :  { %1018 = vperm.xlu1 %1161, %v972_v62  }
 0x34d   :  { %v983_v4 = vpop.permute.xlu1 %982  ;;  %v1007_v17 = vpop.permute.xlu0 %1006 }
 0x352   :  { %v995_v6 = vpop.permute.xlu1 %994 }
 0x357   :  { %v977_v7 = vpop.permute.xlu1 %976 }
 0x358   :  { %v979_v8 = vmax.f32 %v977_v7, %v1257_v0 }
 0x35a   :  { %v985_v9 = vmin.f32 %v983_v4, %v979_v8 }
 0x35c   :  { %v986_v10 = vsub.f32 %v1257_v0, %v985_v9  ;;  %v990_v12 = vpop.permute.xlu1 %989 }
 0x35d   :  { %v992_v11 = vmax.f32 %v990_v12, %v1261_v2 }
 0x35e   :  { %987 = vst [vmem:[#allocation5] sm:$0xff] %v986_v10 }
 0x35f   :  { %v997_v13 = vmin.f32 %v995_v6, %v992_v11 }
 0x361   :  { %v998_v14 = vsub.f32 %v1261_v2, %v997_v13  ;;  %v1002_v15 = vpop.permute.xlu1 %1001 }
 0x362   :  { %v1004_v16 = vmax.f32 %v1002_v15, %v1259_v1 }
 0x363   :  { %999 = vst [vmem:[#allocation5 + $0x8] sm:$0xff] %v998_v14 }
 0x364   :  { %v1009_v18 = vmin.f32 %v1007_v17, %v1004_v16 }
 0x366   :  { %v1010_v19 = vsub.f32 %v1259_v1, %v1009_v18  ;;  %v1014_v20 = vpop.permute.xlu1 %1013 }
 0x367   :  { %v1016_v21 = vmax.f32 %v1014_v20, %v1265_v5 }
 0x368   :  { %1011 = vst [vmem:[#allocation5 + $0x10] sm:$0xff] %v1010_v19 }
 0x36a   :  { %v1019_v0 = vpop.permute.xlu1 %1018 }
 0x36b   :  { %v1021_v22 = vmin.f32 %v1019_v0, %v1016_v21 }
 0x36d   :  { %v1022_v23 = vsub.f32 %v1265_v5, %v1021_v22 }
 0x36f   :  { %1023 = vst [vmem:[#allocation5 + $0x18] sm:$0xff] %v1022_v23 }
 0x370   :  { %1201 = shalt.err (!%p1198_p12)
}
 0x371   :  { %s1202_s4 = scalar_lea.hbm %s1347_s3, 512 }
 0x372   :  { %p1203_p13 = scmp.ne.s32.totalorder %s1347_s3, %s1202_s4  ;;  %p1206_p0 = scmp.lt.u32.totalorder %s1202_s4, %s1347_s3 }
 0x374   :  { %p1208_p1 = pnand %p1206_p0, %p1203_p13 }
 0x376   :  { %1211 = shalt.err (!%p1208_p1)
}
 0x377   :  { %1033 = dma.vmem_to_hbm [thread:$0]  %s1031_s2, 512, %s1347_s3, [#allocation4]  }
 0x378   :  { %1214 = dma.done.wait [#allocation4], 512  }
 0x379   :  { %1215 = vsyncadd [#allocation4], 4294966784 }
 0x37a   :  { %1037 = vsyncpa [#allocation3], 1 }
 0x37b   :  { %1038 = vsyncpa [#allocation4], 1 }

</bundles_post_ra>
